<compile_context>
chip_gen: v7x
topology: tpu7x:2x2x1
jax: 0.10.0
libtpu: 0.0.40
codegen_flags: <defaults>
</compile_context>

<pallas_src>
import jax
import jax.numpy as jnp
from jax.experimental import pallas as pl
from jax.experimental.pallas import tpu as pltpu


# ---------------------------------------------------------------------------
# Kernel 1: fused conv (valid, stride 1) + bias + ReLU + 2x2/2 max-pool.
#   w_ref   : (Cout, Cin*K*K)        bf16
#   b_ref   : (Cout, 1)              f32
#   cols_ref: (1, 4, Cin*K*K, P)     bf16   (P = POH*POW, one batch sample)
#   o_ref   : (1, Cout, P)           bf16
# pool(relu(conv+b)) == relu(max_q(conv_q) + b) since the bias is constant
# over the 2x2 window and ReLU is monotonic.
# ---------------------------------------------------------------------------
def _conv_relu_pool_kernel(w_ref, b_ref, cols_ref, o_ref):
    w = w_ref[...]
    m = jnp.dot(w, cols_ref[0, 0], preferred_element_type=jnp.float32)
    for q in range(1, 4):
        m = jnp.maximum(
            m, jnp.dot(w, cols_ref[0, q], preferred_element_type=jnp.float32)
        )
    m = jnp.maximum(m + b_ref[...], 0.0)
    o_ref[0] = m.astype(o_ref.dtype)


def _im2col_pool(x, k):
    """x: (N, C, H, W) -> (N, 4, C*k*k, POH*POW).

    Quad q = 2*a + b holds the im2col patches for conv output positions
    (2*poh + a, 2*pow + b); a max over q implements MaxPool2d(2, 2).
    Row order is (c, kh, kw), matching torch Conv2d weight flattening.
    """
    n, c, h, w = x.shape
    oh, ow = h - k + 1, w - k + 1
    poh, pw = oh // 2, ow // 2
    quads = []
    for a in (0, 1):
        for b in (0, 1):
            pats = [
                x[:, :, a + di: a + di + 2 * poh: 2, b + dj: b + dj + 2 * pw: 2]
                for di in range(k)
                for dj in range(k)
            ]
            p = jnp.stack(pats, axis=2)                    # (N, C, k*k, POH, POW)
            quads.append(p.reshape(n, c * k * k, poh * pw))
    return jnp.stack(quads, axis=1), poh, pw               # (N, 4, C*k*k, P)


def conv_relu_pool(x, w2d, b2d, k):
    """x: (N, Cin, H, W); w2d: (Cout, Cin*k*k) bf16; b2d: (Cout, 1) f32."""
    n = x.shape[0]
    cout, ckk = w2d.shape
    cols, poh, pw = _im2col_pool(x.astype(jnp.bfloat16), k)
    p = poh * pw
    out = pl.pallas_call(
        _conv_relu_pool_kernel,
        out_shape=jax.ShapeDtypeStruct((n, cout, p), jnp.bfloat16),
        grid=(n,),
        in_specs=[
            pl.BlockSpec((cout, ckk), lambda i: (0, 0)),
            pl.BlockSpec((cout, 1), lambda i: (0, 0)),
            pl.BlockSpec((1, 4, ckk, p), lambda i: (i, 0, 0, 0)),
        ],
        out_specs=pl.BlockSpec((1, cout, p), lambda i: (i, 0, 0)),
        compiler_params=pltpu.CompilerParams(dimension_semantics=("parallel",)),
    )(w2d, b2d, cols)
    return out.reshape(n, cout, poh, pw)


# ---------------------------------------------------------------------------
# Kernel 2: fused fc1 -> ReLU -> fc2 -> ReLU -> fc3.
# Intermediates (bm,120)/(bm,84) stay on-chip; weights are bf16, accum f32.
# ---------------------------------------------------------------------------
def _fc3_kernel(x_ref, w1_ref, b1_ref, w2_ref, b2_ref, w3_ref, b3_ref, o_ref):
    h = jnp.dot(x_ref[...], w1_ref[...], preferred_element_type=jnp.float32) + b1_ref[...]
    h = jnp.maximum(h, 0.0).astype(w2_ref.dtype)
    h = jnp.dot(h, w2_ref[...], preferred_element_type=jnp.float32) + b2_ref[...]
    h = jnp.maximum(h, 0.0).astype(w3_ref.dtype)
    out = jnp.dot(h, w3_ref[...], preferred_element_type=jnp.float32) + b3_ref[...]
    o_ref[...] = out.astype(o_ref.dtype)


def fc3_block(x, w1, b1, w2, b2, w3, b3, *, block_m=256):
    m, k1 = x.shape
    bm = min(block_m, m)
    d1, d2, d3 = w1.shape[1], w2.shape[1], w3.shape[1]
    return pl.pallas_call(
        _fc3_kernel,
        out_shape=jax.ShapeDtypeStruct((m, d3), jnp.float32),
        grid=(pl.cdiv(m, bm),),
        in_specs=[
            pl.BlockSpec((bm, k1), lambda i: (i, 0)),
            pl.BlockSpec((k1, d1), lambda i: (0, 0)),
            pl.BlockSpec((1, d1), lambda i: (0, 0)),
            pl.BlockSpec((d1, d2), lambda i: (0, 0)),
            pl.BlockSpec((1, d2), lambda i: (0, 0)),
            pl.BlockSpec((d2, d3), lambda i: (0, 0)),
            pl.BlockSpec((1, d3), lambda i: (0, 0)),
        ],
        out_specs=pl.BlockSpec((bm, d3), lambda i: (i, 0)),
        compiler_params=pltpu.CompilerParams(dimension_semantics=("parallel",)),
    )(x, w1, b1, w2, b2, w3, b3)


# ---------------------------------------------------------------------------
# Parameters (deterministic, PyTorch-default-style uniform init)
# ---------------------------------------------------------------------------
def init_params(key):
    def uni(k, shape, fan_in):
        bound = 1.0 / jnp.sqrt(jnp.float32(fan_in))
        return jax.random.uniform(k, shape, jnp.float32, -bound, bound)

    ks = jax.random.split(key, 10)
    return {
        "conv1_w": uni(ks[0], (6, 3, 5, 5), 3 * 5 * 5),
        "conv1_b": uni(ks[1], (6,), 3 * 5 * 5),
        "conv2_w": uni(ks[2], (16, 6, 5, 5), 6 * 5 * 5),
        "conv2_b": uni(ks[3], (16,), 6 * 5 * 5),
        "fc1_w": uni(ks[4], (120, 16 * 5 * 5), 16 * 5 * 5),
        "fc1_b": uni(ks[5], (120,), 16 * 5 * 5),
        "fc2_w": uni(ks[6], (84, 120), 120),
        "fc2_b": uni(ks[7], (84,), 120),
        "fc3_w": uni(ks[8], (10, 84), 84),
        "fc3_b": uni(ks[9], (10,), 84),
    }


def prepare_params(p):
    """Hoist all layout work (reshape / transpose / dtype cast) out of the jit."""
    return {
        "conv1_w": p["conv1_w"].reshape(6, -1).astype(jnp.bfloat16),
        "conv1_b": p["conv1_b"].reshape(6, 1).astype(jnp.float32),
        "conv2_w": p["conv2_w"].reshape(16, -1).astype(jnp.bfloat16),
        "conv2_b": p["conv2_b"].reshape(16, 1).astype(jnp.float32),
        "fc1_w": p["fc1_w"].T.astype(jnp.bfloat16),
        "fc1_b": p["fc1_b"].reshape(1, -1).astype(jnp.float32),
        "fc2_w": p["fc2_w"].T.astype(jnp.bfloat16),
        "fc2_b": p["fc2_b"].reshape(1, -1).astype(jnp.float32),
        "fc3_w": p["fc3_w"].T.astype(jnp.bfloat16),
        "fc3_b": p["fc3_b"].reshape(1, -1).astype(jnp.float32),
    }


# ---------------------------------------------------------------------------
# Full forward pass (mirrors Net.forward)
# ---------------------------------------------------------------------------
def net_forward(pp, x):
    x = conv_relu_pool(x, pp["conv1_w"], pp["conv1_b"], k=5)   # (N, 6, 14, 14)
    x = conv_relu_pool(x, pp["conv2_w"], pp["conv2_b"], k=5)   # (N, 16, 5, 5)
    x = x.reshape(x.shape[0], -1)                              # torch.flatten(x, 1) -> (N, 400)
    return fc3_block(x, pp["fc1_w"], pp["fc1_b"],
                     pp["fc2_w"], pp["fc2_b"],
                     pp["fc3_w"], pp["fc3_b"])                 # (N, 10) f32


if __name__ == "__main__":
    key = jax.random.PRNGKey(0)
    pkey, xkey = jax.random.split(key)
    params = prepare_params(init_params(pkey))
    # CIFAR-10-sized input: fc1 = 16*5*5 requires 3x32x32 spatial input.
    x = jax.random.normal(xkey, (2, 3, 32, 32), jnp.float32)
    out = jax.jit(net_forward)(params, x)
    out = jax.block_until_ready(out)
    assert out.shape == (2, 10) and out.dtype == jnp.float32
    print("KERNEL_OK")
</pallas_src>

<mosaic_0001>
module attributes {stable_mosaic.version = 11 : i64} {
  func.func @_conv_relu_pool_kernel(%arg0: i32, %arg1: memref<6x75xbf16, #tpu.memory_space<vmem>>, %arg2: memref<6x1xf32, #tpu.memory_space<vmem>>, %arg3: memref<1x4x75x196xbf16, #tpu.memory_space<vmem>>, %arg4: memref<1x6x196xbf16, #tpu.memory_space<vmem>>) attributes {dimension_semantics = [#tpu.dimension_semantics<parallel>], iteration_bounds = array<i64: 2>, scalar_prefetch = 0 : i64, scratch_operands = 0 : i64, tpu.core_type = #tpu.core_type<tc>, window_params = [{pipeline_mode = #tpu.pipeline_mode<synchronous>, transform_indices = @transform_0, window_bounds = array<i64: 6, 75>}, {pipeline_mode = #tpu.pipeline_mode<synchronous>, transform_indices = @transform_1, window_bounds = array<i64: 6, 1>}, {transform_indices = @transform_2, window_bounds = array<i64: 1, 4, 75, 196>}, {transform_indices = @transform_3, window_bounds = array<i64: 1, 6, 196>}]} {
    %c0 = arith.constant 0 : index
    %c0_0 = arith.constant 0 : index
    %0 = vector.load %arg1[%c0, %c0_0] : memref<6x75xbf16, #tpu.memory_space<vmem>>, vector<6x75xbf16>
    %c0_1 = arith.constant 0 : index
    %c0_2 = arith.constant 0 : index
    %c0_3 = arith.constant 0 : index
    %c0_4 = arith.constant 0 : index
    %1 = vector.load %arg3[%c0_1, %c0_2, %c0_3, %c0_4] : memref<1x4x75x196xbf16, #tpu.memory_space<vmem>>, vector<1x1x75x196xbf16>
    %2 = vector.shape_cast %1 : vector<1x1x75x196xbf16> to vector<75x196xbf16>
    %cst = arith.constant dense<0.000000e+00> : vector<6x196xf32>
    %3 = tpu.matmul %0, %2, %cst {dimension_numbers = #tpu.dot_dimension_numbers<[1], [0], [0], [1], [0, 0, 1, 1], [], []>} : vector<6x75xbf16>, vector<75x196xbf16>, vector<6x196xf32> -> vector<6x196xf32>
    %c0_5 = arith.constant 0 : index
    %c1 = arith.constant 1 : index
    %c0_6 = arith.constant 0 : index
    %c0_7 = arith.constant 0 : index
    %4 = vector.load %arg3[%c0_5, %c1, %c0_6, %c0_7] : memref<1x4x75x196xbf16, #tpu.memory_space<vmem>>, vector<1x1x75x196xbf16>
    %5 = vector.shape_cast %4 : vector<1x1x75x196xbf16> to vector<75x196xbf16>
    %cst_8 = arith.constant dense<0.000000e+00> : vector<6x196xf32>
    %6 = tpu.matmul %0, %5, %cst_8 {dimension_numbers = #tpu.dot_dimension_numbers<[1], [0], [0], [1], [0, 0, 1, 1], [], []>} : vector<6x75xbf16>, vector<75x196xbf16>, vector<6x196xf32> -> vector<6x196xf32>
    %7 = arith.maximumf %3, %6 : vector<6x196xf32>
    %c0_9 = arith.constant 0 : index
    %c2 = arith.constant 2 : index
    %c0_10 = arith.constant 0 : index
    %c0_11 = arith.constant 0 : index
    %8 = vector.load %arg3[%c0_9, %c2, %c0_10, %c0_11] : memref<1x4x75x196xbf16, #tpu.memory_space<vmem>>, vector<1x1x75x196xbf16>
    %9 = vector.shape_cast %8 : vector<1x1x75x196xbf16> to vector<75x196xbf16>
    %cst_12 = arith.constant dense<0.000000e+00> : vector<6x196xf32>
    %10 = tpu.matmul %0, %9, %cst_12 {dimension_numbers = #tpu.dot_dimension_numbers<[1], [0], [0], [1], [0, 0, 1, 1], [], []>} : vector<6x75xbf16>, vector<75x196xbf16>, vector<6x196xf32> -> vector<6x196xf32>
    %11 = arith.maximumf %7, %10 : vector<6x196xf32>
    %c0_13 = arith.constant 0 : index
    %c3 = arith.constant 3 : index
    %c0_14 = arith.constant 0 : index
    %c0_15 = arith.constant 0 : index
    %12 = vector.load %arg3[%c0_13, %c3, %c0_14, %c0_15] : memref<1x4x75x196xbf16, #tpu.memory_space<vmem>>, vector<1x1x75x196xbf16>
    %13 = vector.shape_cast %12 : vector<1x1x75x196xbf16> to vector<75x196xbf16>
    %cst_16 = arith.constant dense<0.000000e+00> : vector<6x196xf32>
    %14 = tpu.matmul %0, %13, %cst_16 {dimension_numbers = #tpu.dot_dimension_numbers<[1], [0], [0], [1], [0, 0, 1, 1], [], []>} : vector<6x75xbf16>, vector<75x196xbf16>, vector<6x196xf32> -> vector<6x196xf32>
    %15 = arith.maximumf %11, %14 : vector<6x196xf32>
    %c0_17 = arith.constant 0 : index
    %c0_18 = arith.constant 0 : index
    %16 = vector.load %arg2[%c0_17, %c0_18] : memref<6x1xf32, #tpu.memory_space<vmem>>, vector<6x1xf32>
    %17 = vector.broadcast %16 : vector<6x1xf32> to vector<6x196xf32>
    %18 = arith.addf %15, %17 : vector<6x196xf32>
    %cst_19 = arith.constant 0.000000e+00 : f32
    %19 = vector.broadcast %cst_19 : f32 to vector<6x196xf32>
    %20 = arith.maximumf %18, %19 : vector<6x196xf32>
    %21 = arith.truncf %20 : vector<6x196xf32> to vector<6x196xbf16>
    %c0_20 = arith.constant 0 : index
    %c0_21 = arith.constant 0 : index
    %c0_22 = arith.constant 0 : index
    %22 = vector.load %arg4[%c0_20, %c0_21, %c0_22] : memref<1x6x196xbf16, #tpu.memory_space<vmem>>, vector<1x6x196xbf16>
    %23 = vector.shape_cast %22 : vector<1x6x196xbf16> to vector<6x196xbf16>
    %24 = vector.shape_cast %21 : vector<6x196xbf16> to vector<1x6x196xbf16>
    tpu.vector_store %arg4[%c0_20, %c0_21, %c0_22], %24 {strides = array<i32>} : memref<1x6x196xbf16, #tpu.memory_space<vmem>>, vector<1x6x196xbf16>,
    return
  }
  func.func @transform_0(%arg0: i32) -> (i32, i32) {
    %c0_i32 = arith.constant 0 : i32
    %c0_i32_0 = arith.constant 0 : i32
    %c0_i32_1 = arith.constant 0 : i32
    return %c0_i32, %c0_i32_0 : i32, i32
  }
  func.func @transform_1(%arg0: i32) -> (i32, i32) {
    %c0_i32 = arith.constant 0 : i32
    %c0_i32_0 = arith.constant 0 : i32
    %c0_i32_1 = arith.constant 0 : i32
    return %c0_i32, %c0_i32_0 : i32, i32
  }
  func.func @transform_2(%arg0: i32) -> (i32, i32, i32, i32) {
    %c0_i32 = arith.constant 0 : i32
    %c0_i32_0 = arith.constant 0 : i32
    %c0_i32_1 = arith.constant 0 : i32
    %c0_i32_2 = arith.constant 0 : i32
    return %arg0, %c0_i32, %c0_i32_0, %c0_i32_1 : i32, i32, i32, i32
  }
  func.func @transform_3(%arg0: i32) -> (i32, i32, i32) {
    %c0_i32 = arith.constant 0 : i32
    %c0_i32_0 = arith.constant 0 : i32
    %c0_i32_1 = arith.constant 0 : i32
    return %arg0, %c0_i32, %c0_i32_0 : i32, i32, i32
  }
}

module attributes {stable_mosaic.version = 11 : i64} {
  func.func @_conv_relu_pool_kernel(%arg0: i32, %arg1: memref<16x150xbf16, #tpu.memory_space<vmem>>, %arg2: memref<16x1xf32, #tpu.memory_space<vmem>>, %arg3: memref<1x4x150x25xbf16, #tpu.memory_space<vmem>>, %arg4: memref<1x16x25xbf16, #tpu.memory_space<vmem>>) attributes {dimension_semantics = [#tpu.dimension_semantics<parallel>], iteration_bounds = array<i64: 2>, scalar_prefetch = 0 : i64, scratch_operands = 0 : i64, tpu.core_type = #tpu.core_type<tc>, window_params = [{pipeline_mode = #tpu.pipeline_mode<synchronous>, transform_indices = @transform_0, window_bounds = array<i64: 16, 150>}, {pipeline_mode = #tpu.pipeline_mode<synchronous>, transform_indices = @transform_1, window_bounds = array<i64: 16, 1>}, {transform_indices = @transform_2, window_bounds = array<i64: 1, 4, 150, 25>}, {transform_indices = @transform_3, window_bounds = array<i64: 1, 16, 25>}]} {
    %c0 = arith.constant 0 : index
    %c0_0 = arith.constant 0 : index
    %0 = vector.load %arg1[%c0, %c0_0] : memref<16x150xbf16, #tpu.memory_space<vmem>>, vector<16x150xbf16>
    %c0_1 = arith.constant 0 : index
    %c0_2 = arith.constant 0 : index
    %c0_3 = arith.constant 0 : index
    %c0_4 = arith.constant 0 : index
    %1 = vector.load %arg3[%c0_1, %c0_2, %c0_3, %c0_4] : memref<1x4x150x25xbf16, #tpu.memory_space<vmem>>, vector<1x1x150x25xbf16>
    %2 = vector.shape_cast %1 : vector<1x1x150x25xbf16> to vector<150x25xbf16>
    %cst = arith.constant dense<0.000000e+00> : vector<16x25xf32>
    %3 = tpu.matmul %0, %2, %cst {dimension_numbers = #tpu.dot_dimension_numbers<[1], [0], [0], [1], [0, 0, 1, 1], [], []>} : vector<16x150xbf16>, vector<150x25xbf16>, vector<16x25xf32> -> vector<16x25xf32>
    %c0_5 = arith.constant 0 : index
    %c1 = arith.constant 1 : index
    %c0_6 = arith.constant 0 : index
    %c0_7 = arith.constant 0 : index
    %4 = vector.load %arg3[%c0_5, %c1, %c0_6, %c0_7] : memref<1x4x150x25xbf16, #tpu.memory_space<vmem>>, vector<1x1x150x25xbf16>
    %5 = vector.shape_cast %4 : vector<1x1x150x25xbf16> to vector<150x25xbf16>
    %cst_8 = arith.constant dense<0.000000e+00> : vector<16x25xf32>
    %6 = tpu.matmul %0, %5, %cst_8 {dimension_numbers = #tpu.dot_dimension_numbers<[1], [0], [0], [1], [0, 0, 1, 1], [], []>} : vector<16x150xbf16>, vector<150x25xbf16>, vector<16x25xf32> -> vector<16x25xf32>
    %7 = arith.maximumf %3, %6 : vector<16x25xf32>
    %c0_9 = arith.constant 0 : index
    %c2 = arith.constant 2 : index
    %c0_10 = arith.constant 0 : index
    %c0_11 = arith.constant 0 : index
    %8 = vector.load %arg3[%c0_9, %c2, %c0_10, %c0_11] : memref<1x4x150x25xbf16, #tpu.memory_space<vmem>>, vector<1x1x150x25xbf16>
    %9 = vector.shape_cast %8 : vector<1x1x150x25xbf16> to vector<150x25xbf16>
    %cst_12 = arith.constant dense<0.000000e+00> : vector<16x25xf32>
    %10 = tpu.matmul %0, %9, %cst_12 {dimension_numbers = #tpu.dot_dimension_numbers<[1], [0], [0], [1], [0, 0, 1, 1], [], []>} : vector<16x150xbf16>, vector<150x25xbf16>, vector<16x25xf32> -> vector<16x25xf32>
    %11 = arith.maximumf %7, %10 : vector<16x25xf32>
    %c0_13 = arith.constant 0 : index
    %c3 = arith.constant 3 : index
    %c0_14 = arith.constant 0 : index
    %c0_15 = arith.constant 0 : index
    %12 = vector.load %arg3[%c0_13, %c3, %c0_14, %c0_15] : memref<1x4x150x25xbf16, #tpu.memory_space<vmem>>, vector<1x1x150x25xbf16>
    %13 = vector.shape_cast %12 : vector<1x1x150x25xbf16> to vector<150x25xbf16>
    %cst_16 = arith.constant dense<0.000000e+00> : vector<16x25xf32>
    %14 = tpu.matmul %0, %13, %cst_16 {dimension_numbers = #tpu.dot_dimension_numbers<[1], [0], [0], [1], [0, 0, 1, 1], [], []>} : vector<16x150xbf16>, vector<150x25xbf16>, vector<16x25xf32> -> vector<16x25xf32>
    %15 = arith.maximumf %11, %14 : vector<16x25xf32>
    %c0_17 = arith.constant 0 : index
    %c0_18 = arith.constant 0 : index
    %16 = vector.load %arg2[%c0_17, %c0_18] : memref<16x1xf32, #tpu.memory_space<vmem>>, vector<16x1xf32>
    %17 = vector.broadcast %16 : vector<16x1xf32> to vector<16x25xf32>
    %18 = arith.addf %15, %17 : vector<16x25xf32>
    %cst_19 = arith.constant 0.000000e+00 : f32
    %19 = vector.broadcast %cst_19 : f32 to vector<16x25xf32>
    %20 = arith.maximumf %18, %19 : vector<16x25xf32>
    %21 = arith.truncf %20 : vector<16x25xf32> to vector<16x25xbf16>
    %c0_20 = arith.constant 0 : index
    %c0_21 = arith.constant 0 : index
    %c0_22 = arith.constant 0 : index
    %22 = vector.load %arg4[%c0_20, %c0_21, %c0_22] : memref<1x16x25xbf16, #tpu.memory_space<vmem>>, vector<1x16x25xbf16>
    %23 = vector.shape_cast %22 : vector<1x16x25xbf16> to vector<16x25xbf16>
    %24 = vector.shape_cast %21 : vector<16x25xbf16> to vector<1x16x25xbf16>
    tpu.vector_store %arg4[%c0_20, %c0_21, %c0_22], %24 {strides = array<i32>} : memref<1x16x25xbf16, #tpu.memory_space<vmem>>, vector<1x16x25xbf16>,
    return
  }
  func.func @transform_0(%arg0: i32) -> (i32, i32) {
    %c0_i32 = arith.constant 0 : i32
    %c0_i32_0 = arith.constant 0 : i32
    %c0_i32_1 = arith.constant 0 : i32
    return %c0_i32, %c0_i32_0 : i32, i32
  }
  func.func @transform_1(%arg0: i32) -> (i32, i32) {
    %c0_i32 = arith.constant 0 : i32
    %c0_i32_0 = arith.constant 0 : i32
    %c0_i32_1 = arith.constant 0 : i32
    return %c0_i32, %c0_i32_0 : i32, i32
  }
  func.func @transform_2(%arg0: i32) -> (i32, i32, i32, i32) {
    %c0_i32 = arith.constant 0 : i32
    %c0_i32_0 = arith.constant 0 : i32
    %c0_i32_1 = arith.constant 0 : i32
    %c0_i32_2 = arith.constant 0 : i32
    return %arg0, %c0_i32, %c0_i32_0, %c0_i32_1 : i32, i32, i32, i32
  }
  func.func @transform_3(%arg0: i32) -> (i32, i32, i32) {
    %c0_i32 = arith.constant 0 : i32
    %c0_i32_0 = arith.constant 0 : i32
    %c0_i32_1 = arith.constant 0 : i32
    return %arg0, %c0_i32, %c0_i32_0 : i32, i32, i32
  }
}

module attributes {stable_mosaic.version = 11 : i64} {
  func.func @_fc3_kernel(%arg0: i32, %arg1: memref<2x400xbf16, #tpu.memory_space<vmem>>, %arg2: memref<400x120xbf16, #tpu.memory_space<vmem>>, %arg3: memref<1x120xf32, #tpu.memory_space<vmem>>, %arg4: memref<120x84xbf16, #tpu.memory_space<vmem>>, %arg5: memref<1x84xf32, #tpu.memory_space<vmem>>, %arg6: memref<84x10xbf16, #tpu.memory_space<vmem>>, %arg7: memref<1x10xf32, #tpu.memory_space<vmem>>, %arg8: memref<2x10xf32, #tpu.memory_space<vmem>>) attributes {dimension_semantics = [#tpu.dimension_semantics<parallel>], iteration_bounds = array<i64: 1>, scalar_prefetch = 0 : i64, scratch_operands = 0 : i64, tpu.core_type = #tpu.core_type<tc>, window_params = [{transform_indices = @transform_0, window_bounds = array<i64: 2, 400>}, {pipeline_mode = #tpu.pipeline_mode<synchronous>, transform_indices = @transform_1, window_bounds = array<i64: 400, 120>}, {pipeline_mode = #tpu.pipeline_mode<synchronous>, transform_indices = @transform_2, window_bounds = array<i64: 1, 120>}, {pipeline_mode = #tpu.pipeline_mode<synchronous>, transform_indices = @transform_3, window_bounds = array<i64: 120, 84>}, {pipeline_mode = #tpu.pipeline_mode<synchronous>, transform_indices = @transform_4, window_bounds = array<i64: 1, 84>}, {pipeline_mode = #tpu.pipeline_mode<synchronous>, transform_indices = @transform_5, window_bounds = array<i64: 84, 10>}, {pipeline_mode = #tpu.pipeline_mode<synchronous>, transform_indices = @transform_6, window_bounds = array<i64: 1, 10>}, {transform_indices = @transform_7, window_bounds = array<i64: 2, 10>}]} {
    %c0 = arith.constant 0 : index
    %c0_0 = arith.constant 0 : index
    %0 = vector.load %arg1[%c0, %c0_0] : memref<2x400xbf16, #tpu.memory_space<vmem>>, vector<2x400xbf16>
    %c0_1 = arith.constant 0 : index
    %c0_2 = arith.constant 0 : index
    %1 = vector.load %arg2[%c0_1, %c0_2] : memref<400x120xbf16, #tpu.memory_space<vmem>>, vector<400x120xbf16>
    %cst = arith.constant dense<0.000000e+00> : vector<2x120xf32>
    %2 = tpu.matmul %0, %1, %cst {dimension_numbers = #tpu.dot_dimension_numbers<[1], [0], [0], [1], [0, 0, 1, 1], [], []>} : vector<2x400xbf16>, vector<400x120xbf16>, vector<2x120xf32> -> vector<2x120xf32>
    %c0_3 = arith.constant 0 : index
    %c0_4 = arith.constant 0 : index
    %3 = vector.load %arg3[%c0_3, %c0_4] : memref<1x120xf32, #tpu.memory_space<vmem>>, vector<1x120xf32>
    %4 = vector.broadcast %3 : vector<1x120xf32> to vector<2x120xf32>
    %5 = arith.addf %2, %4 : vector<2x120xf32>
    %cst_5 = arith.constant 0.000000e+00 : f32
    %6 = vector.broadcast %cst_5 : f32 to vector<2x120xf32>
    %7 = arith.maximumf %5, %6 : vector<2x120xf32>
    %8 = arith.truncf %7 : vector<2x120xf32> to vector<2x120xbf16>
    %c0_6 = arith.constant 0 : index
    %c0_7 = arith.constant 0 : index
    %9 = vector.load %arg4[%c0_6, %c0_7] : memref<120x84xbf16, #tpu.memory_space<vmem>>, vector<120x84xbf16>
    %cst_8 = arith.constant dense<0.000000e+00> : vector<2x84xf32>
    %10 = tpu.matmul %8, %9, %cst_8 {dimension_numbers = #tpu.dot_dimension_numbers<[1], [0], [0], [1], [0, 0, 1, 1], [], []>} : vector<2x120xbf16>, vector<120x84xbf16>, vector<2x84xf32> -> vector<2x84xf32>
    %c0_9 = arith.constant 0 : index
    %c0_10 = arith.constant 0 : index
    %11 = vector.load %arg5[%c0_9, %c0_10] : memref<1x84xf32, #tpu.memory_space<vmem>>, vector<1x84xf32>
    %12 = vector.broadcast %11 : vector<1x84xf32> to vector<2x84xf32>
    %13 = arith.addf %10, %12 : vector<2x84xf32>
    %cst_11 = arith.constant 0.000000e+00 : f32
    %14 = vector.broadcast %cst_11 : f32 to vector<2x84xf32>
    %15 = arith.maximumf %13, %14 : vector<2x84xf32>
    %16 = arith.truncf %15 : vector<2x84xf32> to vector<2x84xbf16>
    %c0_12 = arith.constant 0 : index
    %c0_13 = arith.constant 0 : index
    %17 = vector.load %arg6[%c0_12, %c0_13] : memref<84x10xbf16, #tpu.memory_space<vmem>>, vector<84x10xbf16>
    %cst_14 = arith.constant dense<0.000000e+00> : vector<2x10xf32>
    %18 = tpu.matmul %16, %17, %cst_14 {dimension_numbers = #tpu.dot_dimension_numbers<[1], [0], [0], [1], [0, 0, 1, 1], [], []>} : vector<2x84xbf16>, vector<84x10xbf16>, vector<2x10xf32> -> vector<2x10xf32>
    %c0_15 = arith.constant 0 : index
    %c0_16 = arith.constant 0 : index
    %19 = vector.load %arg7[%c0_15, %c0_16] : memref<1x10xf32, #tpu.memory_space<vmem>>, vector<1x10xf32>
    %20 = vector.broadcast %19 : vector<1x10xf32> to vector<2x10xf32>
    %21 = arith.addf %18, %20 : vector<2x10xf32>
    %c0_17 = arith.constant 0 : index
    %c0_18 = arith.constant 0 : index
    %22 = vector.load %arg8[%c0_17, %c0_18] : memref<2x10xf32, #tpu.memory_space<vmem>>, vector<2x10xf32>
    tpu.vector_store %arg8[%c0_17, %c0_18], %21 {strides = array<i32>} : memref<2x10xf32, #tpu.memory_space<vmem>>, vector<2x10xf32>,
    return
  }
  func.func @transform_0(%arg0: i32) -> (i32, i32) {
    %c0_i32 = arith.constant 0 : i32
    %c0_i32_0 = arith.constant 0 : i32
    return %arg0, %c0_i32 : i32, i32
  }
  func.func @transform_1(%arg0: i32) -> (i32, i32) {
    %c0_i32 = arith.constant 0 : i32
    %c0_i32_0 = arith.constant 0 : i32
    %c0_i32_1 = arith.constant 0 : i32
    return %c0_i32, %c0_i32_0 : i32, i32
  }
  func.func @transform_2(%arg0: i32) -> (i32, i32) {
    %c0_i32 = arith.constant 0 : i32
    %c0_i32_0 = arith.constant 0 : i32
    %c0_i32_1 = arith.constant 0 : i32
    return %c0_i32, %c0_i32_0 : i32, i32
  }
  func.func @transform_3(%arg0: i32) -> (i32, i32) {
    %c0_i32 = arith.constant 0 : i32
    %c0_i32_0 = arith.constant 0 : i32
    %c0_i32_1 = arith.constant 0 : i32
    return %c0_i32, %c0_i32_0 : i32, i32
  }
  func.func @transform_4(%arg0: i32) -> (i32, i32) {
    %c0_i32 = arith.constant 0 : i32
    %c0_i32_0 = arith.constant 0 : i32
    %c0_i32_1 = arith.constant 0 : i32
    return %c0_i32, %c0_i32_0 : i32, i32
  }
  func.func @transform_5(%arg0: i32) -> (i32, i32) {
    %c0_i32 = arith.constant 0 : i32
    %c0_i32_0 = arith.constant 0 : i32
    %c0_i32_1 = arith.constant 0 : i32
    return %c0_i32, %c0_i32_0 : i32, i32
  }
  func.func @transform_6(%arg0: i32) -> (i32, i32) {
    %c0_i32 = arith.constant 0 : i32
    %c0_i32_0 = arith.constant 0 : i32
    %c0_i32_1 = arith.constant 0 : i32
    return %c0_i32, %c0_i32_0 : i32, i32
  }
  func.func @transform_7(%arg0: i32) -> (i32, i32) {
    %c0_i32 = arith.constant 0 : i32
    %c0_i32_0 = arith.constant 0 : i32
    return %arg0, %c0_i32 : i32, i32
  }
}

</mosaic_0001>

<bundles_post_ra>
// kernel: net_forward.3
= control target key start
LH: loop header
LB: loop body
LE: loop exit
PB: predicated region body
PF: predicated region fallthrough
CT: control target
= control target key end

     0   :  { %s876_s12 = smov 0   ;;  %s964_s0 = inlined_call_operand.vmem [shape: bf16[6,75], index: 0, kind: input, shape index: {}]   ;;  %s965_s1 = inlined_call_operand.vmem [shape: f32[6,1], index: 1, kind: input, shape index: {}]   ;;  %s966_s2 = inlined_call_operand.vmem [shape: bf16[2,4,75,196], index: 2, kind: input, shape index: {}]   ;;  %s967_s3 = inlined_call_operand.vmem [shape: bf16[2,6,196], index: 3, kind: output, shape index: {}]  }
   0x1 LB: > { %s687_s13 = sadd.s32 4294967295, %s852_s12   ;;  %p691_p0 = scmp.ge.s32.totalorder %s852_s12, 1  ;;  %s852_s12 = sphi %s876_s12, %s13_s12  }
   0x2   : > { %p137_p1 = scmp.lt.s32.totalorder %s852_s12, 3 }
   0x4   : > { %p138_p2 = pnand %p691_p0, %p137_p1 }
   0x5   : > { %p161_p3 = scmp.lt.s32.totalorder (!%p138_p2), %s687_s13, 1  ;;  %v854_v0 = vmov (!%p138_p2), 0   ;;  %v610_v1 = vld [vmem:[%s965_s1] sm:$0x3f] (!%p138_p2)  ;;  %vm235_vm0 = vcmask (!%p138_p2), 1044480   ;;  %vm236_vm1 = vcmask (!%p138_p2), 1045504  }
   0x6   : > { %141 = sbr.rel (%p138_p2) target bundleno = 282 (0x11a), region = 32  ;;  %277 = vmatprep.mubr.bf16.mxu0 (!%p138_p2), %v854_v0  ;;  %383 = vmatprep.mubr.bf16.mxu1 (!%p138_p2), %v854_v0  ;;  %v855_v11 = vmov (!%p138_p2), 65535   ;;  %v172_v31 = vld [vmem:[%s964_s0] sm:$0x7] (!%p138_p2)  ;;  %vm231_vm2 = vcmask (!%p138_p2), 613376   ;;  %vm628_vm3 = vcmask (!%p138_p2), 1042432  }
   0x7   : > { %785 = vset.pattern.permute.xlu0 (!%p138_p2), %v854_v0  ;;  %v237_v12 = vsel (!%p138_p2), %vm235_vm0, 4294967295, %v855_v11  ;;  %vm629_vm4 = vcmask (!%p138_p2), 555012  }
   0x8   : > { %613 = vperm.xlu0 (!%p138_p2), %785, %v610_v1   ;;  %v914_v20 = vsel (!%p138_p2), %vm236_vm1, %v237_v12, 0  ;;  %vm630_vm5 = vmor (!%p138_p2), %vm629_vm4, %vm628_vm3 }
   0xd   : > { %s969_s13 = smov (!%p161_p3, %s687_s13), 1 }
   0xe   : > { %s774_s16 = smul.u32 320, %s969_s13  ;;  %s772_s22 = sshll.u32 %s969_s13, 3 }
   0xf   : > { %s170_s25 = scalar_lea.vmem %s967_s3, %s772_s22 }
  0x10   : > { %s896_s19 = scalar_lea.vmem %s966_s2, %s774_s16 }
  0x11   : > { %v786_v2 = vld [vmem:[%s896_s19 + $0x4] ss:$8 sps:$4 sm:$0xff]   ;;  %v788_v3 = vld [vmem:[%s896_s19 + $0x54] ss:$8 sps:$4 sm:$0xff]   ;;  %v790_v4 = vld [vmem:[%s896_s19] ss:$8 sps:$4 sm:$0xff]  }
  0x12   : > { %245 = vmatprep.subr.bf16.mxu0 %v786_v2  ;;  %v791_v5 = vld [vmem:[%s896_s19 + $0x50] ss:$8 sps:$4 sm:$0xff]   ;;  %351 = vmatprep.subr.bf16.mxu1 %v788_v3  ;;  %v792_v6 = vld [vmem:[%s896_s19 + $0x14] ss:$8 sps:$4 sm:$0xff]   ;;  %v794_v7 = vld [vmem:[%s896_s19 + $0x64] ss:$8 sps:$4 sm:$0xff]  }
  0x13   : > { %246 = vmatpush1.bf16.msra.mxu0 %v790_v4  ;;  %352 = vmatpush1.bf16.msra.mxu1 %v791_v5  ;;  %v796_v8 = vld [vmem:[%s896_s19 + $0x10] ss:$8 sps:$4 sm:$0xff]   ;;  %v797_v9 = vld [vmem:[%s896_s19 + $0x60] ss:$8 sps:$4 sm:$0xff]   ;;  %v798_v10 = vld [vmem:[%s896_s19 + $0x24] ss:$8 sps:$4 sm:$0xff]  }
  0x14   : > { %247 = vmatprep.subr.bf16.mxu0 %v792_v6  ;;  %353 = vmatprep.subr.bf16.mxu1 %v794_v7  ;;  %v800_v13 = vld [vmem:[%s896_s19 + $0x74] ss:$8 sps:$4 sm:$0xff]   ;;  %v802_v14 = vld [vmem:[%s896_s19 + $0x20] ss:$8 sps:$4 sm:$0xff]   ;;  %v803_v15 = vld [vmem:[%s896_s19 + $0x70] ss:$8 sps:$4 sm:$0xff]  }
  0x15   : > { %v804_v16 = vld [vmem:[%s896_s19 + $0x34] ss:$8 sps:$4 sm:$0xff]   ;;  %v806_v17 = vld [vmem:[%s896_s19 + $0x84] ss:$8 sps:$4 sm:$0xff]   ;;  %v808_v18 = vld [vmem:[%s896_s19 + $0x30] ss:$8 sps:$4 sm:$0xff]  }
  0x16   : > { %v809_v19 = vld [vmem:[%s896_s19 + $0x80] ss:$8 sps:$4 sm:$0xff]   ;;  %v810_v21 = vld [vmem:[%s896_s19 + $0x44] ss:$8 sps:$4 sm:$0x3f]  }
  0x17   : > { %248 = vmatpush1.bf16.msra.mxu0 %v796_v8  ;;  %354 = vmatpush1.bf16.msra.mxu1 %v797_v9  ;;  %v812_v22 = vld [vmem:[%s896_s19 + $0x94] ss:$8 sps:$4 sm:$0x3f]   ;;  %v243_v23 = vand.u32 %v810_v21, %v914_v20  ;;  %v814_v24 = vld [vmem:[%s896_s19 + $0x40] ss:$8 sps:$4 sm:$0x3f]  }
  0x18   : > { %249 = vmatprep.subr.bf16.mxu0 %v798_v10  ;;  %355 = vmatprep.subr.bf16.mxu1 %v800_v13  ;;  %v815_v25 = vld [vmem:[%s896_s19 + $0x90] ss:$8 sps:$4 sm:$0x3f]   ;;  %v349_v26 = vand.u32 %v812_v22, %v914_v20  ;;  %v240_v27 = vand.u32 %v814_v24, %v914_v20  ;;  %v818_v29 = vld [vmem:[%s896_s19 + $0xa4] ss:$8 sps:$4 sm:$0xff]  }
  0x19   : > { %v346_v28 = vand.u32 %v815_v25, %v914_v20  ;;  %v821_v30 = vld [vmem:[%s896_s19 + $0xf4] ss:$8 sps:$4 sm:$0xff]   ;;  %v816_v32 = vld [vmem:[%s896_s19 + $0xa0] ss:$8 sps:$4 sm:$0xff]   ;;  %v819_v33 = vld [vmem:[%s896_s19 + $0xf0] ss:$8 sps:$4 sm:$0xff]  }
  0x1a   : > { %v824_v34 = vld [vmem:[%s896_s19 + $0xb4] ss:$8 sps:$4 sm:$0xff]   ;;  %v827_v35 = vld [vmem:[%s896_s19 + $0x104] ss:$8 sps:$4 sm:$0xff]   ;;  %v822_v36 = vld [vmem:[%s896_s19 + $0xb0] ss:$8 sps:$4 sm:$0xff]  }
  0x1b   : > { %250 = vmatpush1.bf16.msra.mxu0 %v802_v14  ;;  %356 = vmatpush1.bf16.msra.mxu1 %v803_v15  ;;  %v825_v37 = vld [vmem:[%s896_s19 + $0x100] ss:$8 sps:$4 sm:$0xff]   ;;  %v830_v38 = vld [vmem:[%s896_s19 + $0xc4] ss:$8 sps:$4 sm:$0xff]   ;;  %v833_v39 = vld [vmem:[%s896_s19 + $0x114] ss:$8 sps:$4 sm:$0xff]  }
  0x1c   : > { %251 = vmatprep.subr.bf16.mxu0 %v804_v16  ;;  %357 = vmatprep.subr.bf16.mxu1 %v806_v17  ;;  %v828_v40 = vld [vmem:[%s896_s19 + $0xc0] ss:$8 sps:$4 sm:$0xff]   ;;  %v831_v41 = vld [vmem:[%s896_s19 + $0x110] ss:$8 sps:$4 sm:$0xff]   ;;  %v836_v42 = vld [vmem:[%s896_s19 + $0xd4] ss:$8 sps:$4 sm:$0xff]  }
  0x1d   : > { %v839_v43 = vld [vmem:[%s896_s19 + $0x124] ss:$8 sps:$4 sm:$0xff]   ;;  %v845_v45 = vld [vmem:[%s896_s19 + $0x134] ss:$8 sps:$4 sm:$0x3f]  }
  0x1e   : > { %v842_v44 = vld [vmem:[%s896_s19 + $0xe4] ss:$8 sps:$4 sm:$0x3f]   ;;  %v834_v46 = vld [vmem:[%s896_s19 + $0xd0] ss:$8 sps:$4 sm:$0xff]   ;;  %v565_v51 = vand.u32 %v845_v45, %v914_v20 }
  0x1f   : > { %252 = vmatpush1.bf16.msra.mxu0 %v808_v18  ;;  %358 = vmatpush1.bf16.msra.mxu1 %v809_v19  ;;  %v837_v47 = vld [vmem:[%s896_s19 + $0x120] ss:$8 sps:$4 sm:$0xff]   ;;  %v843_v49 = vld [vmem:[%s896_s19 + $0x130] ss:$8 sps:$4 sm:$0x3f]   ;;  %v457_v50 = vand.u32 %v842_v44, %v914_v20 }
  0x20   : > { %253 = vmatprep.subr.bf16.mxu0 %v243_v23  ;;  %359 = vmatprep.subr.bf16.mxu1 %v349_v26  ;;  %v840_v48 = vld [vmem:[%s896_s19 + $0xe0] ss:$8 sps:$4 sm:$0x3f]   ;;  %v562_v53 = vand.u32 %v843_v49, %v914_v20 }
  0x21   : > { %v454_v52 = vand.u32 %v840_v48, %v914_v20 }
  0x23   : > { %254 = vmatpush1.bf16.msra.mxu0 %v240_v27  ;;  %360 = vmatpush1.bf16.msra.mxu1 %v346_v28 }
  0x24   : > { %459 = vmatprep.subr.bf16.mxu0 %v818_v29  ;;  %567 = vmatprep.subr.bf16.mxu1 %v821_v30 }
  0x26   : > { %705 = vmatmul.mubr.msk.bf16.vlgmr.msra.gmra.mrb[0].mxu0 %vm231_vm2, %v172_v31  ;;  %726 = vmatmul.mubr.msk.bf16.vlgmr.msra.gmra.mrb[0].mxu1 %vm231_vm2, %v172_v31 }
  0x27   : > { %460 = vmatpush1.bf16.msra.mxu0 %v816_v32  ;;  %568 = vmatpush1.bf16.msra.mxu1 %v819_v33 }
  0x28   : > { %461 = vmatprep.subr.bf16.mxu0 %v824_v34  ;;  %569 = vmatprep.subr.bf16.mxu1 %v827_v35 }
  0x29   : > { %491 = vmatprep.mubr.bf16.mxu0 %v854_v0  ;;  %599 = vmatprep.mubr.bf16.mxu1 %v854_v0 }
  0x2b   : > { %462 = vmatpush1.bf16.msra.mxu0 %v822_v36  ;;  %570 = vmatpush1.bf16.msra.mxu1 %v825_v37 }
  0x2c   : > { %463 = vmatprep.subr.bf16.mxu0 %v830_v38  ;;  %571 = vmatprep.subr.bf16.mxu1 %v833_v39 }
  0x2f   : > { %464 = vmatpush1.bf16.msra.mxu0 %v828_v40  ;;  %572 = vmatpush1.bf16.msra.mxu1 %v831_v41 }
  0x30   : > { %465 = vmatprep.subr.bf16.mxu0 %v836_v42  ;;  %573 = vmatprep.subr.bf16.mxu1 %v839_v43 }
  0x33   : > { %466 = vmatpush1.bf16.msra.mxu0 %v834_v46  ;;  %574 = vmatpush1.bf16.msra.mxu1 %v837_v47 }
  0x34   : > { %467 = vmatprep.subr.bf16.mxu0 %v457_v50  ;;  %575 = vmatprep.subr.bf16.mxu1 %v565_v51 }
  0x37   : > { %468 = vmatpush1.bf16.msra.mxu0 %v454_v52  ;;  %576 = vmatpush1.bf16.msra.mxu1 %v562_v53 }
  0x3a   : > { %747 = vmatmul.mubr.msk.bf16.vlgmr.msra.gmra.mrb[4].mxu0 %vm231_vm2, %v172_v31  ;;  %768 = vmatmul.mubr.msk.bf16.vlgmr.msra.gmra.mrb[4].mxu1 %vm231_vm2, %v172_v31 }
  0x87   : > { %v614_v0 = vpop.permute.xlu0 %613 }
  0xf9   : > { %v279_v54 = vpop.f32.mrb[0].mxu0  ;;  %v385_v55 = vpop.f32.mrb[0].mxu1 }
  0xfa   : > { %v392_v56 = vmax.f32 %v279_v54, %v385_v55  ;;  %v281_v57 = vpop.f32.mrb[1].mxu0  ;;  %v387_v58 = vpop.f32.mrb[1].mxu1 }
  0xfb   : > { %v393_v59 = vmax.f32 %v281_v57, %v387_v58  ;;  %v283_v60 = vpop.f32.mrb[2].mxu0  ;;  %v389_v61 = vpop.f32.mrb[2].mxu1 }
  0xfc   : > { %v284_v62 = vpop.f32.mrb[3].mxu0  ;;  %v390_v63 = vpop.f32.mrb[3].mxu1 }
 0x10d   : > { %v493_v1 = vpop.f32.mrb[4].mxu0  ;;  %v601_v2 = vpop.f32.mrb[4].mxu1 }
 0x10e   : > { %v500_v3 = vmax.f32 %v392_v56, %v493_v1  ;;  %v495_v4 = vpop.f32.mrb[5].mxu0  ;;  %v603_v5 = vpop.f32.mrb[5].mxu1 }
 0x10f   : > { %v501_v6 = vmax.f32 %v393_v59, %v495_v4  ;;  %v497_v7 = vpop.f32.mrb[6].mxu0  ;;  %v605_v8 = vpop.f32.mrb[6].mxu1 }
 0x110   : > { %v608_v9 = vmax.f32 %v500_v3, %v601_v2  ;;  %v498_v10 = vpop.f32.mrb[7].mxu0  ;;  %v606_v11 = vpop.f32.mrb[7].mxu1 }
 0x111   : > { %v609_v12 = vmax.f32 %v501_v6, %v603_v5 }
 0x112   : > { %v616_v13 = vadd.f32 %v614_v0, %v608_v9 }
 0x113   : > { %v617_v14 = vadd.f32 %v614_v0, %v609_v12 }
 0x114   : > { %v618_v15 = vmax.f32 %v616_v13, 0.0 }
 0x115   : > { %v619_v16 = vmax.f32 %v617_v14, 0.0 }
 0x117   : > { %v773_v17 = vpack.c.bf16 %v619_v16, %v618_v15 }
 0x119   : > { %631 = vst.msk [vmem:[%s170_s25] sm:$0x77] %vm630_vm5, %v773_v17 }
 0x11a PF: > { %s13_s12 = sadd.s32 1, %s852_s12  }
 0x11b   : > { %p10_p4 = scmp.ge.s32.totalorder %s13_s12, 4  }
 0x11d   :  { %12 = sbr.rel (!%p10_p4) target bundleno = 1 (0x1), region = 65 }

// kernel: net_forward.4
= control target key start
LH: loop header
LB: loop body
LE: loop exit
PB: predicated region body
PF: predicated region fallthrough
CT: control target
= control target key end

     0   :  { %s960_s12 = smov 0   ;;  %s1096_s0 = inlined_call_operand.vmem [shape: bf16[16,150], index: 0, kind: input, shape index: {}]   ;;  %s1097_s1 = inlined_call_operand.vmem [shape: f32[16,1], index: 1, kind: input, shape index: {}]   ;;  %s1098_s2 = inlined_call_operand.vmem [shape: bf16[2,4,150,25], index: 2, kind: input, shape index: {}]   ;;  %s1099_s3 = inlined_call_operand.vmem [shape: bf16[2,16,25], index: 3, kind: output, shape index: {}]  }
   0x1 LB: > { %s759_s13 = sadd.s32 4294967295, %s937_s12   ;;  %p763_p0 = scmp.ge.s32.totalorder %s937_s12, 1  ;;  %s937_s12 = sphi %s960_s12, %s13_s12  }
   0x2   : > { %p137_p1 = scmp.lt.s32.totalorder %s937_s12, 3 }
   0x4   : > { %p138_p2 = pnand %p763_p0, %p137_p1 }
   0x5   : > { %p161_p3 = scmp.lt.s32.totalorder (!%p138_p2), %s759_s13, 1  ;;  %vm259_vm0 = vcmask (!%p138_p2), 179200   ;;  %v939_v0 = vmov (!%p138_p2), 0   ;;  %v973_v1 = vld [vmem:[%s1096_s0 + $0x4] ss:$8 sps:$4 sm:$0xff] (!%p138_p2)   ;;  %vm263_vm1 = vcmask (!%p138_p2), 1042432  }
   0x6   : > { %141 = sbr.rel (%p138_p2) target bundleno = 322 (0x142), region = 32  ;;  %267 = vmatprep.subr.bf16.mxu0 (!%p138_p2), %v939_v0  ;;  %388 = vmatprep.subr.bf16.mxu1 (!%p138_p2), %v939_v0  ;;  %v677_v2 = vld [vmem:[%s1097_s1] sm:$0xff] (!%p138_p2)  ;;  %v678_v3 = vld [vmem:[%s1097_s1 + $0x8] sm:$0xff] (!%p138_p2)  ;;  %vm701_vm2 = vcmask (!%p138_p2), 199680  }
   0x7   : > { %887 = vset.pattern.permute.xlu0 (!%p138_p2), %v939_v0  ;;  %779 = vmatprep.mubr.msk.bf16.mxu0 (!%p138_p2), %vm259_vm0, %v973_v1  ;;  %v1037_v26 = vld [vmem:[%s1096_s0] ss:$8 sps:$4 sm:$0xff] (!%p138_p2)  }
   0x8   : > { %809 = vmatprep.mubr.msk.bf16.mxu1 (!%p138_p2), %vm259_vm0, %v973_v1  ;;  %681 = vperm.xlu0 (!%p138_p2), %887, %v677_v2  }
   0xc   : > { %686 = vperm.xlu0 (!%p138_p2), %887, %v678_v3  }
   0xd   : > { %s1101_s13 = smov (!%p161_p3, %s759_s13), 1 }
   0xe   : > { %s877_s18 = smul.u32 304, %s1101_s13  ;;  %s874_s26 = sshll.u32 %s1101_s13, 3 }
   0xf   : > { %s170_s29 = scalar_lea.vmem %s1099_s3, %s874_s26 }
  0x10   : > { %s992_s23 = scalar_lea.vmem %s1098_s2, %s877_s18 }
  0x11   : > { %v888_v4 = vld [vmem:[%s992_s23] sm:$0xff]   ;;  %v889_v5 = vld [vmem:[%s992_s23 + $0x4c] sm:$0xff]   ;;  %v891_v7 = vld [vmem:[%s992_s23 + $0x54] sm:$0xff]  }
  0x12   : > { %268 = vmatpush1.bf16.msra.mxu0 %v888_v4  ;;  %v890_v6 = vld [vmem:[%s992_s23 + $0x8] sm:$0xff]   ;;  %389 = vmatpush1.bf16.msra.mxu1 %v889_v5  ;;  %v892_v8 = vld [vmem:[%s992_s23 + $0x10] sm:$0xff]   ;;  %v893_v9 = vld [vmem:[%s992_s23 + $0x5c] sm:$0xff]  }
  0x13   : > { %269 = vmatprep.subr.bf16.mxu0 %v939_v0  ;;  %390 = vmatprep.subr.bf16.mxu1 %v939_v0  ;;  %v894_v10 = vld [vmem:[%s992_s23 + $0x18] sm:$0xff]   ;;  %v895_v11 = vld [vmem:[%s992_s23 + $0x64] sm:$0xff]   ;;  %v897_v13 = vld [vmem:[%s992_s23 + $0x6c] sm:$0xff]  }
  0x14   : > { %v896_v12 = vld [vmem:[%s992_s23 + $0x20] sm:$0xff]   ;;  %v898_v14 = vld [vmem:[%s992_s23 + $0x28] sm:$0xff]   ;;  %v899_v15 = vld [vmem:[%s992_s23 + $0x74] sm:$0xff]  }
  0x15   : > { %v900_v16 = vld [vmem:[%s992_s23 + $0x30] sm:$0xff]   ;;  %v901_v17 = vld [vmem:[%s992_s23 + $0x7c] sm:$0xff]   ;;  %v903_v19 = vld [vmem:[%s992_s23 + $0x84] sm:$0xff]  }
  0x16   : > { %270 = vmatpush1.bf16.msra.mxu0 %v890_v6  ;;  %391 = vmatpush1.bf16.msra.mxu1 %v891_v7  ;;  %v902_v18 = vld [vmem:[%s992_s23 + $0x38] sm:$0xff]   ;;  %v906_v20 = vld [vmem:[%s992_s23 + $0x48] ss:$0 sps:$4 sm:$0x77]   ;;  %v904_v21 = vld [vmem:[%s992_s23 + $0x40] sm:$0xff]  }
  0x17   : > { %271 = vmatprep.subr.bf16.mxu0 %v939_v0  ;;  %392 = vmatprep.subr.bf16.mxu1 %v939_v0  ;;  %v907_v22 = vld [vmem:[%s992_s23 + $0x94] ss:$0 sps:$4 sm:$0x77]   ;;  %v905_v23 = vld [vmem:[%s992_s23 + $0x8c] sm:$0xff]   ;;  %v265_v24 = vsel %vm263_vm1, %v906_v20, 0  ;;  %v911_v27 = vld [vmem:[%s992_s23 + $0x98] sm:$0xff]  }
  0x18   : > { %v386_v25 = vsel %vm263_vm1, %v907_v22, 0  ;;  %v912_v28 = vld [vmem:[%s992_s23 + $0xe4] sm:$0xff]   ;;  %v914_v30 = vld [vmem:[%s992_s23 + $0xec] sm:$0xff]   ;;  %v916_v32 = vld [vmem:[%s992_s23 + $0xf4] sm:$0xff]  }
  0x19   : > { %v913_v29 = vld [vmem:[%s992_s23 + $0xa0] sm:$0xff]   ;;  %v915_v31 = vld [vmem:[%s992_s23 + $0xa8] sm:$0xff]   ;;  %v917_v33 = vld [vmem:[%s992_s23 + $0xb0] sm:$0xff]  }
  0x1a   : > { %272 = vmatpush1.bf16.msra.mxu0 %v892_v8  ;;  %393 = vmatpush1.bf16.msra.mxu1 %v893_v9  ;;  %v918_v34 = vld [vmem:[%s992_s23 + $0xfc] sm:$0xff]   ;;  %v920_v36 = vld [vmem:[%s992_s23 + $0x104] sm:$0xff]   ;;  %v922_v38 = vld [vmem:[%s992_s23 + $0x10c] sm:$0xff]  }
  0x1b   : > { %273 = vmatprep.subr.bf16.mxu0 %v939_v0  ;;  %394 = vmatprep.subr.bf16.mxu1 %v939_v0  ;;  %v919_v35 = vld [vmem:[%s992_s23 + $0xb8] sm:$0xff]   ;;  %v921_v37 = vld [vmem:[%s992_s23 + $0xc0] sm:$0xff]   ;;  %v923_v39 = vld [vmem:[%s992_s23 + $0xc8] sm:$0xff]  }
  0x1c   : > { %v924_v40 = vld [vmem:[%s992_s23 + $0x114] sm:$0xff]   ;;  %v926_v42 = vld [vmem:[%s992_s23 + $0x11c] sm:$0xff]   ;;  %v928_v44 = vld [vmem:[%s992_s23 + $0x124] sm:$0xff]  }
  0x1d   : > { %v925_v41 = vld [vmem:[%s992_s23 + $0xd0] sm:$0xff]   ;;  %v927_v43 = vld [vmem:[%s992_s23 + $0xd8] sm:$0xff]   ;;  %v929_v45 = vld [vmem:[%s992_s23 + $0xe0] ss:$0 sps:$4 sm:$0x77]  }
  0x1e   : > { %274 = vmatpush1.bf16.msra.mxu0 %v894_v10  ;;  %395 = vmatpush1.bf16.msra.mxu1 %v895_v11  ;;  %v930_v46 = vld [vmem:[%s992_s23 + $0x12c] ss:$0 sps:$4 sm:$0x77]   ;;  %v509_v47 = vsel %vm263_vm1, %v929_v45, 0 }
  0x1f   : > { %275 = vmatprep.subr.bf16.mxu0 %v939_v0  ;;  %396 = vmatprep.subr.bf16.mxu1 %v939_v0  ;;  %v632_v48 = vsel %vm263_vm1, %v930_v46, 0 }
  0x22   : > { %276 = vmatpush1.bf16.msra.mxu0 %v896_v12  ;;  %397 = vmatpush1.bf16.msra.mxu1 %v897_v13 }
  0x23   : > { %277 = vmatprep.subr.bf16.mxu0 %v939_v0  ;;  %398 = vmatprep.subr.bf16.mxu1 %v939_v0 }
  0x26   : > { %278 = vmatpush1.bf16.msra.mxu0 %v898_v14  ;;  %399 = vmatpush1.bf16.msra.mxu1 %v899_v15 }
  0x27   : > { %279 = vmatprep.subr.bf16.mxu0 %v939_v0  ;;  %400 = vmatprep.subr.bf16.mxu1 %v939_v0 }
  0x2a   : > { %280 = vmatpush1.bf16.msra.mxu0 %v900_v16  ;;  %401 = vmatpush1.bf16.msra.mxu1 %v901_v17 }
  0x2b   : > { %281 = vmatprep.subr.bf16.mxu0 %v939_v0  ;;  %402 = vmatprep.subr.bf16.mxu1 %v939_v0 }
  0x2e   : > { %282 = vmatpush1.bf16.msra.mxu0 %v902_v18  ;;  %403 = vmatpush1.bf16.msra.mxu1 %v903_v19 }
  0x2f   : > { %283 = vmatprep.subr.bf16.mxu0 %v939_v0  ;;  %404 = vmatprep.subr.bf16.mxu1 %v939_v0 }
  0x32   : > { %284 = vmatpush1.bf16.msra.mxu0 %v904_v21  ;;  %405 = vmatpush1.bf16.msra.mxu1 %v905_v23 }
  0x33   : > { %285 = vmatprep.subr.bf16.mxu0 %v939_v0  ;;  %406 = vmatprep.subr.bf16.mxu1 %v939_v0 }
  0x36   : > { %286 = vmatpush1.bf16.msra.mxu0 %v265_v24  ;;  %407 = vmatpush1.bf16.msra.mxu1 %v386_v25 }
  0x37   : > { %511 = vmatprep.subr.bf16.mxu0 %v939_v0  ;;  %634 = vmatprep.subr.bf16.mxu1 %v939_v0 }
  0x39   : > { %300 = vmatmul.mubr.bf16.vlgmr.msra.gmra.mrb[0].mxu0 %v1037_v26  ;;  %421 = vmatmul.mubr.bf16.vlgmr.msra.gmra.mrb[0].mxu1 %v1037_v26 }
  0x3a   : > { %512 = vmatpush1.bf16.msra.mxu0 %v911_v27  ;;  %635 = vmatpush1.bf16.msra.mxu1 %v912_v28 }
  0x3b   : > { %513 = vmatprep.subr.bf16.mxu0 %v939_v0  ;;  %636 = vmatprep.subr.bf16.mxu1 %v939_v0 }
  0x3c   : > { %839 = vmatprep.mubr.msk.bf16.mxu0 %vm259_vm0, %v973_v1  ;;  %869 = vmatprep.mubr.msk.bf16.mxu1 %vm259_vm0, %v973_v1 }
  0x3e   : > { %514 = vmatpush1.bf16.msra.mxu0 %v913_v29  ;;  %637 = vmatpush1.bf16.msra.mxu1 %v914_v30 }
  0x3f   : > { %515 = vmatprep.subr.bf16.mxu0 %v939_v0  ;;  %638 = vmatprep.subr.bf16.mxu1 %v939_v0 }
  0x42   : > { %516 = vmatpush1.bf16.msra.mxu0 %v915_v31  ;;  %639 = vmatpush1.bf16.msra.mxu1 %v916_v32 }
  0x43   : > { %517 = vmatprep.subr.bf16.mxu0 %v939_v0  ;;  %640 = vmatprep.subr.bf16.mxu1 %v939_v0 }
  0x46   : > { %518 = vmatpush1.bf16.msra.mxu0 %v917_v33  ;;  %641 = vmatpush1.bf16.msra.mxu1 %v918_v34 }
  0x47   : > { %519 = vmatprep.subr.bf16.mxu0 %v939_v0  ;;  %642 = vmatprep.subr.bf16.mxu1 %v939_v0 }
  0x4a   : > { %520 = vmatpush1.bf16.msra.mxu0 %v919_v35  ;;  %643 = vmatpush1.bf16.msra.mxu1 %v920_v36 }
  0x4b   : > { %521 = vmatprep.subr.bf16.mxu0 %v939_v0  ;;  %644 = vmatprep.subr.bf16.mxu1 %v939_v0 }
  0x4e   : > { %522 = vmatpush1.bf16.msra.mxu0 %v921_v37  ;;  %645 = vmatpush1.bf16.msra.mxu1 %v922_v38 }
  0x4f   : > { %523 = vmatprep.subr.bf16.mxu0 %v939_v0  ;;  %646 = vmatprep.subr.bf16.mxu1 %v939_v0 }
  0x52   : > { %524 = vmatpush1.bf16.msra.mxu0 %v923_v39  ;;  %647 = vmatpush1.bf16.msra.mxu1 %v924_v40 }
  0x53   : > { %525 = vmatprep.subr.bf16.mxu0 %v939_v0  ;;  %648 = vmatprep.subr.bf16.mxu1 %v939_v0 }
  0x56   : > { %526 = vmatpush1.bf16.msra.mxu0 %v925_v41  ;;  %649 = vmatpush1.bf16.msra.mxu1 %v926_v42 }
  0x57   : > { %527 = vmatprep.subr.bf16.mxu0 %v939_v0  ;;  %650 = vmatprep.subr.bf16.mxu1 %v939_v0 }
  0x5a   : > { %528 = vmatpush1.bf16.msra.mxu0 %v927_v43  ;;  %651 = vmatpush1.bf16.msra.mxu1 %v928_v44 }
  0x5b   : > { %529 = vmatprep.subr.bf16.mxu0 %v939_v0  ;;  %652 = vmatprep.subr.bf16.mxu1 %v939_v0 }
  0x5e   : > { %530 = vmatpush1.bf16.msra.mxu0 %v509_v47  ;;  %653 = vmatpush1.bf16.msra.mxu1 %v632_v48 }
  0x61   : > { %544 = vmatmul.mubr.bf16.vlgmr.msra.gmra.mrb[4].mxu0 %v1037_v26  ;;  %667 = vmatmul.mubr.bf16.vlgmr.msra.gmra.mrb[4].mxu1 %v1037_v26 }
  0x87   : > { %v682_v59 = vpop.permute.xlu0 %681 }
  0x8b   : > { %v687_v9 = vpop.permute.xlu0 %686 }
 0x10c   : > { %v301_v49 = vpop.f32.mrb[0].mxu0  ;;  %v422_v50 = vpop.f32.mrb[0].mxu1 }
 0x10d   : > { %v303_v51 = vpop.f32.mrb[1].mxu0  ;;  %v429_v52 = vmax.f32 %v301_v49, %v422_v50  ;;  %v424_v53 = vpop.f32.mrb[1].mxu1 }
 0x10e   : > { %v304_v54 = vpop.f32.mrb[2].mxu0  ;;  %v425_v55 = vpop.f32.mrb[2].mxu1 }
 0x10f   : > { %v306_v56 = vpop.f32.mrb[3].mxu0  ;;  %v430_v57 = vmax.f32 %v304_v54, %v425_v55  ;;  %v427_v58 = vpop.f32.mrb[3].mxu1 }
 0x134   : > { %v545_v60 = vpop.f32.mrb[4].mxu0  ;;  %v668_v62 = vpop.f32.mrb[4].mxu1 }
 0x135   : > { %v552_v61 = vmax.f32 %v429_v52, %v545_v60  ;;  %v547_v63 = vpop.f32.mrb[5].mxu0  ;;  %v670_v0 = vpop.f32.mrb[5].mxu1 }
 0x136   : > { %v548_v1 = vpop.f32.mrb[6].mxu0  ;;  %v671_v4 = vpop.f32.mrb[6].mxu1 }
 0x137   : > { %v675_v2 = vmax.f32 %v552_v61, %v668_v62  ;;  %v553_v3 = vmax.f32 %v430_v57, %v548_v1  ;;  %v550_v5 = vpop.f32.mrb[7].mxu0  ;;  %v673_v6 = vpop.f32.mrb[7].mxu1 }
 0x139   : > { %v689_v7 = vadd.f32 %v682_v59, %v675_v2  ;;  %v676_v8 = vmax.f32 %v553_v3, %v671_v4 }
 0x13b   : > { %v691_v10 = vmax.f32 %v689_v7, 0.0  ;;  %v690_v11 = vadd.f32 %v687_v9, %v676_v8 }
 0x13d   : > { %v875_v12 = vpack.c.bf16 %v691_v10, %v691_v10  ;;  %v692_v13 = vmax.f32 %v690_v11, 0.0 }
 0x13f   : > { %702 = vst.msk [vmem:[%s170_s29] sm:$0xf] %vm701_vm2, %v875_v12  ;;  %v876_v14 = vpack.c.bf16 %v692_v13, %v692_v13 }
 0x141   : > { %703 = vst.msk [vmem:[%s170_s29 + $0x4] sm:$0xf] %vm701_vm2, %v876_v14 }
 0x142 PF: > { %s13_s12 = sadd.s32 1, %s937_s12  }
 0x143   : > { %p10_p4 = scmp.ge.s32.totalorder %s13_s12, 4  }
 0x145   :  { %12 = sbr.rel (!%p10_p4) target bundleno = 1 (0x1), region = 65 }

// kernel: net_forward.5
= control target key start
LH: loop header
LB: loop body
LE: loop exit
PB: predicated region body
PF: predicated region fallthrough
CT: control target
= control target key end

     0   :  { %v770_v1 = vmov 0   ;;  %v98_v20 = vlaneseq  ;;  %v771_v25 = vmov 1966171168   ;;  %vm264_vm0 = vcmask 130048   ;;  %s981_s0 = inlined_call_operand.vmem [shape: bf16[2,400], index: 0, kind: input, shape index: {}]   ;;  %s982_s1 = inlined_call_operand.vmem [shape: bf16[400,120], index: 1, kind: input, shape index: {}]   ;;  %s983_s2 = inlined_call_operand.vmem [shape: f32[1,120], index: 2, kind: input, shape index: {}]   ;;  %s984_s3 = inlined_call_operand.vmem [shape: bf16[120,84], index: 3, kind: input, shape index: {}]   ;;  %s985_s4 = inlined_call_operand.vmem [shape: f32[1,84], index: 4, kind: input, shape index: {}]   ;;  %s986_s5 = inlined_call_operand.vmem [shape: bf16[84,10], index: 5, kind: input, shape index: {}]   ;;  %s987_s6 = inlined_call_operand.vmem [shape: f32[1,10], index: 6, kind: input, shape index: {}]   ;;  %s988_s7 = inlined_call_operand.hbm [shape: f32[2,10], index: 7, kind: output, shape index: {}]  }
   0x1   :  { %v707_v0 = vld [vmem:[%s982_s1 + $0x40] sm:$0xff]   ;;  %308 = vmatprep.subr.bf16.mxu1 %v770_v1  ;;  %v710_v4 = vld [vmem:[%s982_s1 + $0x48] sm:$0xff]   ;;  %v713_v7 = vld [vmem:[%s982_s1 + $0x50] sm:$0xff]   ;;  %v96_v26 = vunpack.c.l.s4 %v771_v25  ;;  %v772_v38 = vmov 0.0  }
   0x2   :  { %v708_v2 = vld [vmem:[%s982_s1 + $0x80] sm:$0xff]   ;;  %628 = vmatprep.subr.bf16.mxu0 %v707_v0  ;;  %v711_v5 = vld [vmem:[%s982_s1 + $0x88] sm:$0xff]   ;;  %v714_v8 = vld [vmem:[%s982_s1 + $0x90] sm:$0xff]   ;;  %v99_v27 = vshrl.u32 %v98_v20, 7 }
   0x3   :  { %v709_v3 = vld [vmem:[%s982_s1] sm:$0xff]   ;;  %309 = vmatpush1.bf16.msra.mxu1 %v708_v2  ;;  %v712_v6 = vld [vmem:[%s982_s1 + $0x8] sm:$0xff]   ;;  %v715_v9 = vld [vmem:[%s982_s1 + $0x10] sm:$0xff]   ;;  %v97_v30 = vunpack.c.0.s8 %v96_v26 }
   0x4   :  { %629 = vmatpush3.bf16.msra.mxu0 %v709_v3  ;;  %310 = vmatprep.subr.bf16.mxu1 %v770_v1  ;;  %v716_v10 = vld [vmem:[%s982_s1 + $0x58] sm:$0xff]   ;;  %v719_v13 = vld [vmem:[%s982_s1 + $0x60] sm:$0xff]   ;;  %v722_v16 = vld [vmem:[%s982_s1 + $0x68] sm:$0xff]  }
   0x5   :  { %630 = vmatprep.subr.bf16.mxu0 %v710_v4  ;;  %v717_v11 = vld [vmem:[%s982_s1 + $0x98] sm:$0xff]   ;;  %v720_v14 = vld [vmem:[%s982_s1 + $0xa0] sm:$0xff]   ;;  %v723_v17 = vld [vmem:[%s982_s1 + $0xa8] sm:$0xff]   ;;  %v100_v32 = vsub.s32 %v97_v30, %v99_v27 }
   0x6   :  { %v718_v12 = vld [vmem:[%s982_s1 + $0x18] sm:$0xff]   ;;  %v721_v15 = vld [vmem:[%s982_s1 + $0x20] sm:$0xff]   ;;  %v724_v18 = vld [vmem:[%s982_s1 + $0x28] sm:$0xff]  }
   0x7   :  { %311 = vmatpush1.bf16.msra.mxu1 %v711_v5  ;;  %v725_v19 = vld [vmem:[%s982_s1 + $0x70] sm:$0xff]   ;;  %v583_v23 = vld.sshfl [vmem:[%s981_s0] sm:$0x33 pattern:$0x75316420]  ;;  %v728_v24 = vld [vmem:[%s982_s1 + $0x78] sm:$0xff]  }
   0x8   :  { %631 = vmatpush3.bf16.msra.mxu0 %v712_v6  ;;  %312 = vmatprep.subr.bf16.mxu1 %v770_v1  ;;  %v726_v21 = vld [vmem:[%s982_s1 + $0xb0] sm:$0xff]   ;;  %v729_v28 = vld [vmem:[%s982_s1 + $0xb8] sm:$0xff]   ;;  %v94_v29 = vcombine.high %v583_v23, %v583_v23  ;;  %v731_v33 = vld [vmem:[%s982_s1 + $0xc0] sm:$0xff]   ;;  %v101_v36 = vrot.slane %v583_v23, %v100_v32 }
   0x9   :  { %632 = vmatprep.subr.bf16.mxu0 %v713_v7  ;;  %v727_v22 = vld [vmem:[%s982_s1 + $0x30] sm:$0xff]   ;;  %v730_v31 = vld [vmem:[%s982_s1 + $0x38] sm:$0xff]   ;;  %v732_v34 = vld [vmem:[%s984_s3] sm:$0xff]  }
   0xa   :  { %v108_v35 = vrot.slane %v94_v29, %v100_v32  ;;  %v109_v39 = vcombine.high %v101_v36, %v101_v36  ;;  %v733_v40 = vld [vmem:[%s984_s3 + $0x8] sm:$0xff]  }
   0xb   :  { %313 = vmatpush1.bf16.msra.mxu1 %v714_v8 }
   0xc   :  { %633 = vmatpush3.bf16.msra.mxu0 %v715_v9  ;;  %314 = vmatprep.subr.bf16.mxu1 %v770_v1  ;;  %v110_v37 = vcombine.high %v108_v35, %v108_v35 }
   0xd   :  { %634 = vmatprep.subr.bf16.mxu0 %v716_v10  ;;  %300 = vmatprep.mubr.bf16.mxu0 %v108_v35 }
   0xe   :  { %609 = vmatprep.mubr.msk.bf16.mxu1 %vm264_vm0, %v110_v37 }
   0xf   :  { %315 = vmatpush1.bf16.msra.mxu1 %v717_v11 }
  0x10   :  { %635 = vmatpush3.bf16.msra.mxu0 %v718_v12  ;;  %316 = vmatprep.subr.bf16.mxu1 %v770_v1 }
  0x11   :  { %636 = vmatprep.subr.bf16.mxu0 %v719_v13 }
  0x13   :  { %317 = vmatpush1.bf16.msra.mxu1 %v720_v14 }
  0x14   :  { %637 = vmatpush3.bf16.msra.mxu0 %v721_v15  ;;  %318 = vmatprep.subr.bf16.mxu1 %v770_v1 }
  0x15   :  { %638 = vmatprep.subr.bf16.mxu0 %v722_v16 }
  0x17   :  { %319 = vmatpush1.bf16.msra.mxu1 %v723_v17 }
  0x18   :  { %639 = vmatpush3.bf16.msra.mxu0 %v724_v18  ;;  %320 = vmatprep.subr.bf16.mxu1 %v770_v1 }
  0x19   :  { %640 = vmatprep.subr.bf16.mxu0 %v725_v19 }
  0x1b   :  { %321 = vmatpush1.bf16.msra.mxu1 %v726_v21 }
  0x1c   :  { %641 = vmatpush3.bf16.msra.mxu0 %v727_v22  ;;  %322 = vmatprep.subr.bf16.mxu1 %v770_v1 }
  0x1d   :  { %642 = vmatprep.subr.bf16.mxu0 %v728_v24 }
  0x1f   :  { %323 = vmatpush1.bf16.msra.mxu1 %v729_v28 }
  0x20   :  { %643 = vmatpush3.bf16.msra.mxu0 %v730_v31  ;;  %324 = vmatprep.subr.bf16.mxu1 %v770_v1 }
  0x21   :  { %666 = vmatprep.subr.bf16.mxu0 %v772_v38 }
  0x23   :  { %301 = vmatmul.mubr.bf16.vlgmr.msra.gmra.mrb[0].mxu0 %v101_v36  ;;  %325 = vmatpush1.bf16.msra.mxu1 %v731_v33 }
  0x24   :  { %667 = vmatpush3.bf16.msra.mxu0 %v732_v34 }
  0x25   :  { %12 = vsyncpa [#allocation3], 0  ;;  %668 = vmatprep.subr.bf16.mxu0 %v772_v38  ;;  %686 = vmatprep.subr.bf16.mxu1 %v772_v38  ;;  %v734_v41 = vld [vmem:[%s984_s3 + $0x10] sm:$0xff]   ;;  %v735_v42 = vld [vmem:[%s984_s3 + $0x18] sm:$0xff]   ;;  %vm421_vm1 = vcmask 1043456   ;;  %vm773_vm2 = vmmov 0  }
  0x26   :  { %341 = vmatmul.mubr.bf16.vlgmr.msra.gmra.mrb[0].mxu1 %v109_v39  ;;  %v736_v43 = vld [vmem:[%s984_s3 + $0x20] sm:$0xff]   ;;  %v737_v44 = vld [vmem:[%s984_s3 + $0x28] sm:$0xff]   ;;  %v738_v45 = vld [vmem:[%s984_s3 + $0x30] sm:$0xff]   ;;  %682 = vmatprep.mubr.msk.bf16.mxu0 %vm773_vm2, %v772_v38  ;;  %vm417_vm3 = vcmask 982016   ;;  %vm522_vm4 = vcmask 1041408   ;;  %vm518_vm5 = vcmask 687104  }
  0x27   :  { %v739_v46 = vld [vmem:[%s984_s3 + $0x38] ss:$0 sps:$4 sm:$0xff]   ;;  %698 = vmatprep.mubr.msk.bf16.mxu1 %vm773_vm2, %v772_v38  ;;  %v740_v48 = vld [vmem:[%s986_s5] sm:$0xff]   ;;  %v741_v49 = vld [vmem:[%s986_s5 + $0x8] sm:$0xff]   ;;  %vm566_vm6 = vcmask 74752  }
  0x28   :  { %669 = vmatpush3.bf16.msra.mxu0 %v733_v40  ;;  %v423_v47 = vsel %vm421_vm1, %v739_v46, 0  ;;  %687 = vmatpush3.bf16.msra.mxu1 %v740_v48  ;;  %v742_v50 = vld [vmem:[%s986_s5 + $0x10] sm:$0xff]   ;;  %v743_v51 = vld [vmem:[%s986_s5 + $0x18] sm:$0xff]   ;;  %v582_v54 = vld [vmem:[%s983_s2] ss:$0 sm:$0xff] }
  0x29   :  { %670 = vmatprep.subr.bf16.mxu0 %v772_v38  ;;  %688 = vmatprep.subr.bf16.mxu1 %v772_v38  ;;  %v744_v2 = vld [vmem:[%s986_s5 + $0x20] sm:$0xff]   ;;  %v745_v3 = vld [vmem:[%s986_s5 + $0x28] ss:$0 sps:$4 sm:$0x33]   ;;  %s774_s5 = smov [#allocation2]  }
  0x2a   :  { %v524_v4 = vsel %vm522_vm4, %v745_v3, 0  ;;  %v610_v5 = vld [vmem:[%s985_s4] ss:$0 sm:$0xff]  ;;  %s574_s12 = sshll.u32 %s774_s5, 4  ;;  %s575_s12 = int_to_ptr.vmem [resolvable:$true] %s574_s12 }
  0x2b   :  { %v620_v13 = vld [vmem:[%s987_s6] ss:$0 sm:$0xff]  ;;  %s746_s4 = scalar_lea.vmem %s575_s12, 32  ;;  %p751_p1 = scmp.lt.s32.totalorder %s575_s12, %s575_s12 }
  0x2c   :  { %671 = vmatpush3.bf16.msra.mxu0 %v734_v41  ;;  %689 = vmatpush3.bf16.msra.mxu1 %v741_v49  ;;  %p747_p0 = scmp.ne.s32.totalorder %s575_s12, %s746_s4  ;;  %p752_p2 = scmp.lt.s32.totalorder %s746_s4, %s746_s4 }
  0x2d   :  { %672 = vmatprep.subr.bf16.mxu0 %v772_v38  ;;  %690 = vmatprep.subr.bf16.mxu1 %v772_v38 }
  0x2e   :  { %p753_p3 = por %p752_p2, %p751_p1 }
  0x30   :  { %673 = vmatpush3.bf16.msra.mxu0 %v735_v42  ;;  %691 = vmatpush3.bf16.msra.mxu1 %v742_v50  ;;  %p754_p4 = pnand %p753_p3, %p747_p0 }
  0x31   :  { %674 = vmatprep.subr.bf16.mxu0 %v772_v38  ;;  %692 = vmatprep.subr.bf16.mxu1 %v772_v38 }
  0x34   :  { %675 = vmatpush3.bf16.msra.mxu0 %v736_v43  ;;  %693 = vmatpush3.bf16.msra.mxu1 %v743_v51 }
  0x35   :  { %676 = vmatprep.subr.bf16.mxu0 %v772_v38  ;;  %694 = vmatprep.subr.bf16.mxu1 %v772_v38 }
  0x38   :  { %677 = vmatpush3.bf16.msra.mxu0 %v737_v44  ;;  %695 = vmatpush3.bf16.msra.mxu1 %v744_v2 }
  0x39   :  { %678 = vmatprep.subr.bf16.mxu0 %v772_v38  ;;  %696 = vmatprep.subr.bf16.mxu1 %v772_v38 }
  0x3c   :  { %679 = vmatpush3.bf16.msra.mxu0 %v738_v45  ;;  %697 = vmatpush3.bf16.msra.mxu1 %v524_v4 }
  0x3d   :  { %680 = vmatprep.subr.bf16.mxu0 %v772_v38 }
  0x40   :  { %681 = vmatpush3.bf16.msra.mxu0 %v423_v47 }
  0xf6   :  { %v644_v52 = vpop.f32.mrb[0].mxu0 }
  0xf7   :  { %v645_v53 = vpop.f32.mrb[1].mxu0 }
  0xf8   :  { %v646_v55 = vadd.f32 %v645_v53, %v644_v52  ;;  %v647_v56 = vpop.f32.mrb[2].mxu0 }
  0xf9   :  { %v648_v57 = vpop.f32.mrb[3].mxu0  ;;  %v342_v58 = vpop.f32.mrb[0].mxu1 }
  0xfa   :  { %v303_v59 = vadd.f32 %v646_v55, %v582_v54  ;;  %v344_v60 = vpop.f32.mrb[1].mxu1 }
  0xfb   :  { %v345_v61 = vpop.f32.mrb[2].mxu1 }
  0xfc   :  { %v343_v62 = vadd.f32 %v342_v58, %v303_v59  ;;  %v346_v63 = vpop.f32.mrb[3].mxu1 }
  0xfe   :  { %v348_v0 = vmax.f32 %v343_v62, 0.0 }
 0x100   :  { %v349_v1 = vpack.c.bf16 %v348_v0, %v348_v0 }
 0x102   :  { %683 = vmatmul.mubr.msk.bf16.vlgmr.msra.gmra.mrb[4].mxu0 %vm417_vm3, %v349_v1 }
 0x1d5   :  { %v459_v6 = vpop.f32.mrb[4].mxu0 }
 0x1d6   :  { %v460_v7 = vadd.f32 %v610_v5, %v459_v6  ;;  %v684_v8 = vpop.f32.mrb[5].mxu0 }
 0x1d7   :  { %v462_v9 = vpop.f32.mrb[6].mxu0 }
 0x1d8   :  { %v465_v10 = vmax.f32 %v460_v7, 0.0  ;;  %v685_v11 = vpop.f32.mrb[7].mxu0 }
 0x1da   :  { %v466_v12 = vpack.c.bf16 %v465_v10, %v465_v10 }
 0x1dc   :  { %699 = vmatmul.mubr.msk.bf16.vlgmr.msra.gmra.mrb[4].mxu1 %vm518_vm5, %v466_v12 }
 0x2af   :  { %v560_v14 = vpop.f32.mrb[4].mxu1 }
 0x2b0   :  { %v561_v15 = vadd.f32 %v620_v13, %v560_v14  ;;  %v700_v16 = vpop.f32.mrb[5].mxu1 }
 0x2b1   :  { %v563_v17 = vpop.f32.mrb[6].mxu1 }
 0x2b2   :  { %v701_v18 = vpop.f32.mrb[7].mxu1  ;;  %567 = vst.msk [vmem:[#allocation2] sm:$0x3] %vm566_vm6, %v561_v15 }
 0x2b3   :  { %757 = shalt.err (!%p754_p4)
}
 0x2b4   :  { %s758_s6 = scalar_lea.hbm %s988_s7, 32 }
 0x2b5   :  { %p759_p5 = scmp.ne.s32.totalorder %s988_s7, %s758_s6  ;;  %p762_p6 = scmp.lt.u32.totalorder %s758_s6, %s988_s7 }
 0x2b7   :  { %p764_p7 = pnand %p762_p6, %p759_p5 }
 0x2b9   :  { %767 = shalt.err (!%p764_p7)
}
 0x2ba   :  { %577 = dma.vmem_to_hbm [thread:$0]  %s575_s12, 32, %s988_s7, [#allocation3]  }
 0x2bb   :  { %768 = dma.done.wait [#allocation3], 32  }
 0x2bc   :  { %769 = vsyncadd [#allocation3], 4294967264 }
 0x2bd   :  { %581 = vsyncpa [#allocation3], 1 }

</bundles_post_ra>
